<compile_context>
chip_gen: v7x
topology: tpu7x:2x2x1
jax: 0.10.0
libtpu: 0.0.40
codegen_flags: <defaults>
</compile_context>

<pallas_src>
import math
from functools import partial

import jax
import jax.numpy as jnp
from jax.experimental import pallas as pl
from jax.experimental.pallas import tpu as pltpu


def embedding_kernel(x_ref, w_ref, pe_ref, o_ref):
    # x_ref:  (B, L, F)  f32   full batch, channels-last
    # w_ref:  (3, F, D)  bf16  conv taps: w_ref[k][f, d] = conv_weight[d, f, k]
    # pe_ref: (L, D)     f32   positional encoding
    # o_ref:  (B, L, D)  output dtype
    B, L, _ = x_ref.shape

    # Per-batch circular neighbours via XLU sublane rotates (cheap: XLU slot),
    # stacked along the aligned sublane axis so the MXU sees M = B*L rows.
    prev_rows, cur_rows, next_rows = [], [], []
    for b in range(B):                                    # static unroll, B small
        xb = x_ref[b]                                     # (L, F) f32
        prev_rows.append(pltpu.roll(xb, shift=1, axis=0))       # x[(t-1) % L]
        cur_rows.append(xb)
        next_rows.append(pltpu.roll(xb, shift=L - 1, axis=0))   # x[(t+1) % L]
    x_prev = jnp.concatenate(prev_rows, axis=0).astype(jnp.bfloat16)   # (B*L, F)
    x_cur = jnp.concatenate(cur_rows, axis=0).astype(jnp.bfloat16)
    x_next = jnp.concatenate(next_rows, axis=0).astype(jnp.bfloat16)

    # out[t] = x[(t-1)%L] @ W0 + x[t] @ W1 + x[(t+1)%L] @ W2   (k=3, circular pad=1)
    acc = jnp.dot(x_prev, w_ref[0], preferred_element_type=jnp.float32)
    acc = acc + jnp.dot(x_cur, w_ref[1], preferred_element_type=jnp.float32)
    acc = acc + jnp.dot(x_next, w_ref[2], preferred_element_type=jnp.float32)   # (B*L, D)

    pe = pe_ref[...]                                      # (L, D) f32
    # dropout(p=0.0) == identity.
    # TODO(synk): wire pltpu.prng_seed / stateful_bernoulli here if dropout p > 0 is needed.
    for b in range(B):                                    # sublane-aligned static slices
        o_ref[b] = (acc[b * L:(b + 1) * L, :] + pe).astype(o_ref.dtype)


@partial(jax.jit, static_argnames=("out_dtype",))
def embedding_forward(x, w_taps, pe, *, out_dtype=None):
    """x: (B, L, F) f32, w_taps: (3, F, D) bf16, pe: (L, D) f32 -> (B, L, D)."""
    B, L, _ = x.shape
    D = w_taps.shape[-1]
    out_dtype = x.dtype if out_dtype is None else out_dtype
    # Single kernel invocation, no grid: everything fits trivially in VMEM
    # (x 1 KiB + w 6 KiB + pe 8 KiB + out 16 KiB) and with no pipeline there
    # are no wasted double-buffers for the constant w / pe operands.
    return pl.pallas_call(
        embedding_kernel,
        out_shape=jax.ShapeDtypeStruct((B, L, D), out_dtype),
    )(x, w_taps, pe)


def make_positional_encoding(L, d_model):
    position = jnp.arange(L, dtype=jnp.float32)[:, None]                   # (L, 1)
    div_term = jnp.exp(
        jnp.arange(0, d_model, 2, dtype=jnp.float32)
        * -(math.log(10000.0) / d_model)
    )                                                                      # (D/2,)
    pe = jnp.zeros((L, d_model), dtype=jnp.float32)
    pe = pe.at[:, 0::2].set(jnp.sin(position * div_term))
    pe = pe.at[:, 1::2].set(jnp.cos(position * div_term))
    return pe


def make_conv_weight(key, f_in, d_model):
    # nn.Conv1d weight shape (d_model, f_in, 3); kaiming_normal_(fan_in, leaky_relu)
    fan_in = f_in * 3
    gain = math.sqrt(2.0 / (1.0 + 0.01 ** 2))
    std = gain / math.sqrt(fan_in)
    return jax.random.normal(key, (d_model, f_in, 3), dtype=jnp.float32) * std


def make_conv_taps(w):
    """(D, F, 3) f32 PyTorch layout -> (3, F, D) bf16, tap-major, for the kernel."""
    return jnp.transpose(w, (2, 1, 0)).astype(jnp.bfloat16)


def reference_forward_f32(x, w, pe):
    """Pure-f32 JAX reference of the PyTorch module (circular conv1d, k=3, pad=1)."""
    x_prev = jnp.roll(x, 1, axis=1)
    x_next = jnp.roll(x, -1, axis=1)
    out = (
        jnp.einsum("blf,df->bld", x_prev, w[:, :, 0])
        + jnp.einsum("blf,df->bld", x, w[:, :, 1])
        + jnp.einsum("blf,df->bld", x_next, w[:, :, 2])
    )
    return out + pe[None, :, :]


def reference_forward_matched(x, w_taps, pe):
    """Reference matching the kernel's bf16-operand / f32-accumulate numerics."""
    x_prev = jnp.roll(x, 1, axis=1).astype(jnp.bfloat16)
    x_cur = x.astype(jnp.bfloat16)
    x_next = jnp.roll(x, -1, axis=1).astype(jnp.bfloat16)
    out = (
        jnp.einsum("blf,fd->bld", x_prev, w_taps[0], preferred_element_type=jnp.float32)
        + jnp.einsum("blf,fd->bld", x_cur, w_taps[1], preferred_element_type=jnp.float32)
        + jnp.einsum("blf,fd->bld", x_next, w_taps[2], preferred_element_type=jnp.float32)
    )
    return out + pe[None, :, :]


if __name__ == "__main__":
    B, L, F, D = 2, 16, 8, 128  # batch, seq, f_in, d_model

    key = jax.random.PRNGKey(0)
    kx, kw = jax.random.split(key)
    x = jax.random.normal(kx, (B, L, F), dtype=jnp.float32)

    w = make_conv_weight(kw, F, D)          # (D, F, 3) f32, PyTorch layout
    w_taps = make_conv_taps(w)              # (3, F, D) bf16 for the kernel
    pe = make_positional_encoding(L, D)     # (L, D) f32

    out = jax.block_until_ready(embedding_forward(x, w_taps, pe))
    assert out.shape == (B, L, D) and out.dtype == x.dtype

    # tight check against a precision-matched reference
    ref_matched = reference_forward_matched(x, w_taps, pe)
    assert jnp.allclose(out, ref_matched, atol=1e-4, rtol=1e-4), \
        "mismatch vs matched-precision reference"

    # loose check against the pure-f32 PyTorch-equivalent reference
    # (bf16 matmul operands change numerics at ~1e-2 level vs f32 Conv1d)
    ref_f32 = reference_forward_f32(x, w, pe)
    assert jnp.allclose(out, ref_f32, atol=5e-2, rtol=5e-2), \
        "mismatch vs f32 reference"

    print("KERNEL_OK")
</pallas_src>

<mosaic_0001>
module attributes {stable_mosaic.version = 11 : i64} {
  func.func @embedding_kernel(%arg0: memref<2x16x8xf32, #tpu.memory_space<vmem>>, %arg1: memref<3x8x128xbf16, #tpu.memory_space<vmem>>, %arg2: memref<16x128xf32, #tpu.memory_space<vmem>>, %arg3: memref<2x16x128xf32, #tpu.memory_space<vmem>>) attributes {dimension_semantics = [], scalar_prefetch = 0 : i64, scratch_operands = 0 : i64, tpu.core_type = #tpu.core_type<tc>} {
    %c0 = arith.constant 0 : index
    %c0_0 = arith.constant 0 : index
    %c0_1 = arith.constant 0 : index
    %0 = vector.load %arg0[%c0, %c0_0, %c0_1] : memref<2x16x8xf32, #tpu.memory_space<vmem>>, vector<1x16x8xf32>
    %1 = vector.shape_cast %0 : vector<1x16x8xf32> to vector<16x8xf32>
    %c1_i32 = arith.constant 1 : i32
    %2 = tpu.dynamic_rotate %1 by %c1_i32 dim 0 : vector<16x8xf32>, i32 -> vector<16x8xf32>
    %c15_i32 = arith.constant 15 : i32
    %3 = tpu.dynamic_rotate %1 by %c15_i32 dim 0 : vector<16x8xf32>, i32 -> vector<16x8xf32>
    %c1 = arith.constant 1 : index
    %c0_2 = arith.constant 0 : index
    %c0_3 = arith.constant 0 : index
    %4 = vector.load %arg0[%c1, %c0_2, %c0_3] : memref<2x16x8xf32, #tpu.memory_space<vmem>>, vector<1x16x8xf32>
    %5 = vector.shape_cast %4 : vector<1x16x8xf32> to vector<16x8xf32>
    %c1_i32_4 = arith.constant 1 : i32
    %6 = tpu.dynamic_rotate %5 by %c1_i32_4 dim 0 : vector<16x8xf32>, i32 -> vector<16x8xf32>
    %c15_i32_5 = arith.constant 15 : i32
    %7 = tpu.dynamic_rotate %5 by %c15_i32_5 dim 0 : vector<16x8xf32>, i32 -> vector<16x8xf32>
    %8 = tpu.concatenate %2, %6 in 0 : vector<16x8xf32>, vector<16x8xf32> -> vector<32x8xf32>
    %9 = arith.truncf %8 : vector<32x8xf32> to vector<32x8xbf16>
    %10 = tpu.concatenate %1, %5 in 0 : vector<16x8xf32>, vector<16x8xf32> -> vector<32x8xf32>
    %11 = arith.truncf %10 : vector<32x8xf32> to vector<32x8xbf16>
    %12 = tpu.concatenate %3, %7 in 0 : vector<16x8xf32>, vector<16x8xf32> -> vector<32x8xf32>
    %13 = arith.truncf %12 : vector<32x8xf32> to vector<32x8xbf16>
    %c0_6 = arith.constant 0 : index
    %c0_7 = arith.constant 0 : index
    %c0_8 = arith.constant 0 : index
    %14 = vector.load %arg1[%c0_6, %c0_7, %c0_8] : memref<3x8x128xbf16, #tpu.memory_space<vmem>>, vector<1x8x128xbf16>
    %15 = vector.shape_cast %14 : vector<1x8x128xbf16> to vector<8x128xbf16>
    %cst = arith.constant dense<0.000000e+00> : vector<32x128xf32>
    %16 = tpu.matmul %9, %15, %cst {dimension_numbers = #tpu.dot_dimension_numbers<[1], [0], [0], [1], [0, 0, 1, 1], [], []>} : vector<32x8xbf16>, vector<8x128xbf16>, vector<32x128xf32> -> vector<32x128xf32>
    %c1_9 = arith.constant 1 : index
    %c0_10 = arith.constant 0 : index
    %c0_11 = arith.constant 0 : index
    %17 = vector.load %arg1[%c1_9, %c0_10, %c0_11] : memref<3x8x128xbf16, #tpu.memory_space<vmem>>, vector<1x8x128xbf16>
    %18 = vector.shape_cast %17 : vector<1x8x128xbf16> to vector<8x128xbf16>
    %cst_12 = arith.constant dense<0.000000e+00> : vector<32x128xf32>
    %19 = tpu.matmul %11, %18, %cst_12 {dimension_numbers = #tpu.dot_dimension_numbers<[1], [0], [0], [1], [0, 0, 1, 1], [], []>} : vector<32x8xbf16>, vector<8x128xbf16>, vector<32x128xf32> -> vector<32x128xf32>
    %20 = arith.addf %16, %19 : vector<32x128xf32>
    %c2 = arith.constant 2 : index
    %c0_13 = arith.constant 0 : index
    %c0_14 = arith.constant 0 : index
    %21 = vector.load %arg1[%c2, %c0_13, %c0_14] : memref<3x8x128xbf16, #tpu.memory_space<vmem>>, vector<1x8x128xbf16>
    %22 = vector.shape_cast %21 : vector<1x8x128xbf16> to vector<8x128xbf16>
    %cst_15 = arith.constant dense<0.000000e+00> : vector<32x128xf32>
    %23 = tpu.matmul %13, %22, %cst_15 {dimension_numbers = #tpu.dot_dimension_numbers<[1], [0], [0], [1], [0, 0, 1, 1], [], []>} : vector<32x8xbf16>, vector<8x128xbf16>, vector<32x128xf32> -> vector<32x128xf32>
    %24 = arith.addf %20, %23 : vector<32x128xf32>
    %c0_16 = arith.constant 0 : index
    %c0_17 = arith.constant 0 : index
    %25 = vector.load %arg2[%c0_16, %c0_17] : memref<16x128xf32, #tpu.memory_space<vmem>>, vector<16x128xf32>
    %26 = vector.extract_strided_slice %24 {offsets = [0, 0], sizes = [16, 128], strides = [1, 1]} : vector<32x128xf32> to vector<16x128xf32>
    %27 = arith.addf %26, %25 : vector<16x128xf32>
    %c0_18 = arith.constant 0 : index
    %c0_19 = arith.constant 0 : index
    %c0_20 = arith.constant 0 : index
    %28 = vector.load %arg3[%c0_18, %c0_19, %c0_20] : memref<2x16x128xf32, #tpu.memory_space<vmem>>, vector<1x16x128xf32>
    %29 = vector.shape_cast %28 : vector<1x16x128xf32> to vector<16x128xf32>
    %30 = vector.shape_cast %27 : vector<16x128xf32> to vector<1x16x128xf32>
    tpu.vector_store %arg3[%c0_18, %c0_19, %c0_20], %30 {strides = array<i32>} : memref<2x16x128xf32, #tpu.memory_space<vmem>>, vector<1x16x128xf32>,
    %31 = vector.extract_strided_slice %24 {offsets = [16, 0], sizes = [16, 128], strides = [1, 1]} : vector<32x128xf32> to vector<16x128xf32>
    %32 = arith.addf %31, %25 : vector<16x128xf32>
    %c1_21 = arith.constant 1 : index
    %c0_22 = arith.constant 0 : index
    %c0_23 = arith.constant 0 : index
    %33 = vector.load %arg3[%c1_21, %c0_22, %c0_23] : memref<2x16x128xf32, #tpu.memory_space<vmem>>, vector<1x16x128xf32>
    %34 = vector.shape_cast %33 : vector<1x16x128xf32> to vector<16x128xf32>
    %35 = vector.shape_cast %32 : vector<16x128xf32> to vector<1x16x128xf32>
    tpu.vector_store %arg3[%c1_21, %c0_22, %c0_23], %35 {strides = array<i32>} : memref<2x16x128xf32, #tpu.memory_space<vmem>>, vector<1x16x128xf32>,
    return
  }
}

</mosaic_0001>

<bundles_post_ra>
// kernel: embedding_forward.1
= control target key start
LH: loop header
LB: loop body
LE: loop exit
PB: predicated region body
PF: predicated region fallthrough
CT: control target
= control target key end

     0   :  { %vm57_vm0 = vcmask 1043456   ;;  %v20_v3 = vlaneseq  ;;  %vm50_vm1 = vcmask 64512   ;;  %s412_s0 = inlined_call_operand.vmem [shape: f32[2,16,8], index: 0, kind: input, shape index: {}]   ;;  %s413_s1 = inlined_call_operand.vmem [shape: bf16[3,8,128], index: 1, kind: input, shape index: {}]   ;;  %s414_s2 = inlined_call_operand.vmem [shape: f32[16,128], index: 2, kind: input, shape index: {}]   ;;  %s415_s3 = inlined_call_operand.hbm [shape: f32[2,16,128], index: 3, kind: output, shape index: {}]  }
   0x1   :  { %v47_v0 = vld [vmem:[%s413_s1] sm:$0xf]  ;;  %v17_v2 = vld [vmem:[%s412_s0 + $0x8] sm:$0xff]  ;;  %v259_v11 = vld [vmem:[%s412_s0 + $0x10] sm:$0xff] }
   0x2   :  { %v16_v1 = vld [vmem:[%s412_s0] sm:$0xff]  ;;  %305 = vmatprep.subr.msk.bf16.mxu0 %vm57_vm0, %v47_v0  ;;  %v117_v4 = vsel %vm57_vm0, %v47_v0, 0  ;;  %v19_v6 = vrot.slane %v17_v2, 7  ;;  %v266_v7 = vld [vmem:[%s413_s1 + $0x8] sm:$0xf]  ;;  %v21_v8 = vshrl.u32 %v20_v3, 7 }
   0x3   :  { %v18_v5 = vrot.slane %v16_v1, 7  ;;  %285 = vmatpush3.bf16.msra.mxu0 %v117_v4  ;;  %v25_v9 = vrot.slane %v16_v1, 1  ;;  %v26_v10 = vrot.slane %v17_v2, 1  ;;  %v260_v12 = vld [vmem:[%s412_s0 + $0x18] sm:$0xff]  ;;  %v43_v13 = vpack.c.bf16 %v17_v2, %v16_v1  ;;  %v261_v16 = vld [vmem:[%s413_s1 + $0x4] sm:$0xf] }
   0x4   :  { %306 = vmatprep.subr.msk.bf16.mxu0 %vm57_vm0, %v266_v7  ;;  %v33_v14 = vrot.slane %v259_v11, 7  ;;  %v34_v15 = vrot.slane %v260_v12, 7  ;;  %vm22_vm2 = vcmp.lt.s32.totalorder %v21_v8, 1  ;;  %vm27_vm3 = vcmp.lt.s32.totalorder %v21_v8, 7  ;;  %304 = vmatprep.subr.msk.bf16.mxu1 %vm57_vm0, %v261_v16 }
   0x5   :  { %v59_v17 = vsel %vm57_vm0, %v261_v16, 0  ;;  %280 = vmatprep.mubr.msk.bf16.mxu1 %vm50_vm1, %v43_v13  ;;  %v44_v18 = vpack.c.bf16 %v260_v12, %v259_v11 }
   0x6   :  { %8 = vsyncpa [#allocation3], 0  ;;  %v23_v19 = vsel %vm22_vm2, %v18_v5, %v19_v6  ;;  %v24_v20 = vsel %vm22_vm2, %v19_v6, %v18_v5  ;;  %v35_v21 = vsel %vm22_vm2, %v33_v14, %v34_v15  ;;  %v36_v22 = vsel %vm22_vm2, %v34_v15, %v33_v14  ;;  %279 = vmatpush3.bf16.msra.mxu1 %v59_v17  ;;  %v232_v39 = vld [vmem:[%s414_s2] sm:$0xff]  ;;  %v233_v44 = vld [vmem:[%s414_s2 + $0x8] sm:$0xff]  ;;  %s334_s28 = smov [#allocation2]  }
   0x7   :  { %v41_v23 = vpack.c.bf16 %v23_v19, %v24_v20  ;;  %v42_v24 = vpack.c.bf16 %v35_v21, %v36_v22  ;;  %v28_v25 = vsel %vm27_vm3, %v25_v9, %v26_v10  ;;  %v29_v26 = vsel %vm27_vm3, %v26_v10, %v25_v9  ;;  %s248_s29 = sshll.u32 %s334_s28, 4  ;;  %s249_s29 = int_to_ptr.vmem [resolvable:$true] %s248_s29 }
   0x8   :  { %v177_v27 = vsel %vm57_vm0, %v266_v7, 0  ;;  %v45_v28 = vpack.c.bf16 %v29_v26, %v28_v25  ;;  %v37_v29 = vrot.slane %v259_v11, 1  ;;  %v38_v30 = vrot.slane %v260_v12, 1  ;;  %s310_s30 = scalar_lea.vmem %s249_s29, 512  ;;  %p315_p1 = scmp.lt.s32.totalorder %s249_s29, %s249_s29 }
   0x9   :  { %286 = vmatprep.mubr.msk.bf16.mxu0 %vm50_vm1, %v41_v23  ;;  %281 = vmatmul.mubr.msk.bf16.vlgmr.msra.gmra.mrb[0].mxu1 %vm50_vm1, %v44_v18  ;;  %p311_p0 = scmp.ne.s32.totalorder %s249_s29, %s310_s30  ;;  %p316_p2 = scmp.lt.s32.totalorder %s310_s30, %s310_s30 }
   0xa   :  { %287 = vmatmul.mubr.msk.bf16.vlgmr.msra.gmra.mrb[0].mxu0 %vm50_vm1, %v42_v24  ;;  %v39_v31 = vsel %vm27_vm3, %v37_v29, %v38_v30  ;;  %v40_v32 = vsel %vm27_vm3, %v38_v30, %v37_v29 }
   0xb   :  { %291 = vmatpush3.bf16.msra.mxu0 %v177_v27  ;;  %292 = vmatprep.mubr.msk.bf16.mxu0 %vm50_vm1, %v45_v28  ;;  %v46_v33 = vpack.c.bf16 %v40_v32, %v39_v31  ;;  %p317_p3 = por %p316_p2, %p315_p1 }
   0xd   :  { %p318_p4 = pnand %p317_p3, %p311_p0 }
  0x16   :  { %293 = vmatmul.mubr.msk.bf16.vlgmr.msra.gmra.mrb[0].mxu0 %vm50_vm1, %v46_v33 }
  0xdc   :  { %v282_v34 = vpop.f32.mrb[0].mxu1 }
  0xdd   :  { %v95_v35 = vpop.f32.mrb[1].mxu1 }
  0xde   :  { %v283_v36 = vpop.f32.mrb[2].mxu1 }
  0xdf   :  { %v98_v37 = vpop.f32.mrb[3].mxu1 }
  0xe9   :  { %v294_v38 = vpop.f32.mrb[0].mxu0 }
  0xea   :  { %v296_v40 = vadd.f32 %v294_v38, %v282_v34  ;;  %v213_v41 = vpop.f32.mrb[1].mxu0 }
  0xeb   :  { %v297_v42 = vadd.f32 %v213_v41, %v95_v35  ;;  %v295_v43 = vpop.f32.mrb[2].mxu0 }
  0xec   :  { %v238_v45 = vadd.f32 %v296_v40, %v232_v39  ;;  %v298_v46 = vadd.f32 %v295_v43, %v283_v36  ;;  %v216_v47 = vpop.f32.mrb[3].mxu0 }
  0xed   :  { %v234_v48 = vadd.f32 %v297_v42, %v232_v39  ;;  %v299_v49 = vadd.f32 %v216_v47, %v98_v37 }
  0xee   :  { %241 = vst [vmem:[#allocation2 + $0x10] sm:$0xff] %v238_v45  ;;  %v239_v50 = vadd.f32 %v298_v46, %v233_v44 }
  0xef   :  { %236 = vst [vmem:[#allocation2] sm:$0xff] %v234_v48  ;;  %v235_v51 = vadd.f32 %v299_v49, %v233_v44 }
  0xf0   :  { %242 = vst [vmem:[#allocation2 + $0x18] sm:$0xff] %v239_v50 }
  0xf1   :  { %237 = vst [vmem:[#allocation2 + $0x8] sm:$0xff] %v235_v51 }
  0xf2   :  { %321 = shalt.err (!%p318_p4)
}
  0xf3   :  { %s322_s5 = scalar_lea.hbm %s415_s3, 512 }
  0xf4   :  { %p323_p5 = scmp.ne.s32.totalorder %s415_s3, %s322_s5  ;;  %p326_p6 = scmp.lt.u32.totalorder %s322_s5, %s415_s3 }
  0xf6   :  { %p328_p7 = pnand %p326_p6, %p323_p5 }
  0xf8   :  { %331 = shalt.err (!%p328_p7)
}
  0xf9   :  { %s335_s10 = smov 128   ;;  %s336_s11 = smov 8  }
  0xfa   :  { %254 = dma.vmem_to_hbm [thread:$0]  %s249_s29, 512, %s415_s3, [#allocation3], %s335_s10, %s335_s10, %s336_s11  }
  0xfb   :  { %332 = dma.done.wait [#allocation3], 512  }
  0xfc   :  { %333 = vsyncadd [#allocation3], 4294966784 }
  0xfd   :  { %258 = vsyncpa [#allocation3], 1 }

</bundles_post_ra>
